<compile_context>
chip_gen: v5e
topology: v5e:2x2
jax: 0.10.0
libtpu: 0.0.40
codegen_flags: <defaults>
</compile_context>

<pallas_src>
from functools import partial

import numpy as np
import jax
import jax.numpy as jnp
from jax.experimental import pallas as pl
from jax.experimental.pallas import tpu as pltpu


# ------------------------------ small helpers --------------------------------

def _round_up(x: int, m: int) -> int:
    return ((x + m - 1) // m) * m


def _vmem_capacity_bytes() -> int:
    """Physical VMEM per core; conservative 64 MiB (v7x) if query fails."""
    try:
        return int(pltpu.get_tpu_info().vmem_capacity_bytes)
    except Exception:
        return 64 * 1024 * 1024


def _pad2(a: jax.Array, rows: int, cols: int, value=0) -> jax.Array:
    r, c = a.shape
    if r == rows and c == cols:
        return a  # skip un-hidden XLA pad copies when already aligned
    return jnp.pad(a, ((0, rows - r), (0, cols - c)), constant_values=value)


# --------------------------------- kernels -----------------------------------

def _masked_ffwd_fullk_kernel(x_ref, w_ref, b_ref, deg_ref, o_ref, *,
                              max_deg: int, min_deg: int, n_axis: int,
                              compute_dtype):
    """Single-pass kernel: full K resident, no accumulator scratch."""
    tn = w_ref.shape[0]
    j = pl.program_id(n_axis)

    # MADE out-degrees for this N tile: (row % max_) + min_, only tn int ops.
    out_deg = (j * tn + jax.lax.broadcasted_iota(jnp.int32, (tn, 1), 0)) % max_deg + min_deg
    mask = out_deg >= deg_ref[...]                       # (tn,1) >= (1,tk) -> (tn,tk)

    # Mask in f32 (exact zeros), then cast to the MXU compute dtype.
    wm = jnp.where(mask, w_ref[...], 0.0).astype(compute_dtype)
    xv = x_ref[...].astype(compute_dtype)

    # x:(tm,tk) contracted against wm:(tn,tk) on last axes == x @ (W*mask)^T,
    # f32 accumulation on the MXU.
    acc = jax.lax.dot_general(xv, wm, (((1,), (1,)), ((), ())),
                              preferred_element_type=jnp.float32)
    o_ref[...] = jnp.maximum(acc + b_ref[...], 0.0).astype(o_ref.dtype)


def _masked_ffwd_ktiled_kernel(x_ref, w_ref, b_ref, deg_ref, o_ref, acc_ref, *,
                               max_deg: int, min_deg: int, compute_dtype):
    """K-tiled fallback: f32 VMEM accumulator with init/finalize via pl.when."""
    tn = w_ref.shape[0]
    j = pl.program_id(1)
    k = pl.program_id(2)

    @pl.when(k == 0)
    def _init():
        acc_ref[...] = jnp.zeros_like(acc_ref)

    out_deg = (j * tn + jax.lax.broadcasted_iota(jnp.int32, (tn, 1), 0)) % max_deg + min_deg
    mask = out_deg >= deg_ref[...]                       # in_degrees carry the K offset
    wm = jnp.where(mask, w_ref[...], 0.0).astype(compute_dtype)

    acc_ref[...] += jax.lax.dot_general(
        x_ref[...].astype(compute_dtype), wm,
        (((1,), (1,)), ((), ())), preferred_element_type=jnp.float32)

    @pl.when(k == pl.num_programs(2) - 1)
    def _finalize():
        o_ref[...] = jnp.maximum(acc_ref[...] + b_ref[...], 0.0).astype(o_ref.dtype)


# ----------------------------- tile / path selection -------------------------

def _select_config(B: int, F: int, block_m, block_n, block_k):
    b_pad8 = _round_up(B, 8)
    f_pad = _round_up(F, 128)

    cap = _vmem_capacity_bytes()
    vmem_limit = max(32 * 2**20, min(int(cap * 3 // 4), 96 * 2**20))
    budget = int(vmem_limit * 0.85)

    # M tile (sublane-aligned).
    if block_m is not None:
        tm = max(8, _round_up(min(block_m, b_pad8), 8))
    else:
        tm = min(512, b_pad8)
    b_pad = _round_up(B, tm)
    grid_i = b_pad // tm

    # N tile (lane-aligned).
    if block_n is not None:
        tn = min(_round_up(block_n, 128), f_pad)
    else:
        tn = min(256, f_pad)
        # v7x megacore: make sure some "parallel" axis has >= 2 blocks.
        if grid_i < 2 and f_pad // tn < 2 and f_pad > 128:
            tn = max(128, (f_pad // 2) // 128 * 128)
    fn_pad = _round_up(F, tn)

    # Double-buffered f32 I/O blocks + in-kernel bf16 casts / dot result + headroom.
    def fullk_bytes(tk):
        io = 2 * 4 * (tm * tk + tn * tk + tm * tn)
        tmp = 2 * (tm * tk + tn * tk) + 4 * tm * tn
        return io + tmp + (2 << 20)

    def ktiled_bytes(tk):
        return fullk_bytes(tk) + 4 * tm * tn            # + f32 accumulator scratch

    force_ktiled = block_k is not None and block_k < f_pad
    if not force_ktiled and fullk_bytes(f_pad) <= budget:
        return dict(tm=tm, tn=tn, tk=f_pad, b_pad=b_pad, fn_pad=fn_pad,
                    fk_pad=f_pad, full_k=True, vmem_limit=vmem_limit)

    if block_k is not None:
        tk = min(_round_up(block_k, 128), f_pad)
    else:
        tk = 128
        for cand in (1024, 512, 256, 128):
            c = min(cand, f_pad)
            if ktiled_bytes(c) <= budget:
                tk = c
                break
    fk_pad = _round_up(F, tk)
    return dict(tm=tm, tn=tn, tk=tk, b_pad=b_pad, fn_pad=fn_pad,
                fk_pad=fk_pad, full_k=False, vmem_limit=vmem_limit)


# --------------------------------- wrapper ------------------------------------

def masked_feedforward_block(inputs: jax.Array,
                             weight: jax.Array,
                             bias: jax.Array,
                             in_degrees,
                             autoregressive_features: int,
                             *,
                             use_bf16: bool = True,
                             block_m=None, block_n=None, block_k=None) -> jax.Array:
    """inputs: (B, F); weight: (F, F) [out, in]; bias: (F,); in_degrees: (F,) ints."""
    B, F = inputs.shape
    assert weight.shape == (F, F) and bias.shape == (F,)

    max_deg = max(1, autoregressive_features - 1)
    min_deg = min(1, autoregressive_features - 1)
    compute_dtype = jnp.bfloat16 if use_bf16 else jnp.float32

    cfg = _select_config(B, F, block_m, block_n, block_k)
    tm, tn, tk = cfg["tm"], cfg["tn"], cfg["tk"]
    b_pad, fn_pad, fk_pad = cfg["b_pad"], cfg["fn_pad"], cfg["fk_pad"]

    x_p = _pad2(inputs, b_pad, fk_pad)
    w_p = _pad2(weight, fn_pad, fk_pad)
    b_p = _pad2(bias.reshape(1, F), 1, fn_pad)
    # Padded K columns get a huge degree -> mask False (x/W pads are zero anyway).
    deg_p = _pad2(jnp.asarray(in_degrees, jnp.int32).reshape(1, F), 1, fk_pad,
                  value=np.iinfo(np.int32).max)

    grid_i = b_pad // tm
    grid_j = fn_pad // tn

    if cfg["full_k"]:
        # Put the axis whose re-stream cost is larger on the OUTER position so
        # that operand's blocks are fetched from HBM exactly once.
        x_bytes = b_pad * fk_pad * 4
        w_bytes = fn_pad * fk_pad * 4
        n_outer = grid_j * x_bytes <= grid_i * w_bytes
        if n_outer:
            grid = (grid_j, grid_i)
            x_map = lambda j, i: (i, 0)
            w_map = lambda j, i: (j, 0)
            v_map = lambda j, i: (0, j)
            d_map = lambda j, i: (0, 0)
            o_map = lambda j, i: (i, j)
            n_axis = 0
        else:
            grid = (grid_i, grid_j)
            x_map = lambda i, j: (i, 0)
            w_map = lambda i, j: (j, 0)
            v_map = lambda i, j: (0, j)
            d_map = lambda i, j: (0, 0)
            o_map = lambda i, j: (i, j)
            n_axis = 1

        kernel = partial(_masked_ffwd_fullk_kernel, max_deg=max_deg,
                         min_deg=min_deg, n_axis=n_axis,
                         compute_dtype=compute_dtype)
        out = pl.pallas_call(
            kernel,
            out_shape=jax.ShapeDtypeStruct((b_pad, fn_pad), inputs.dtype),
            grid_spec=pltpu.PrefetchScalarGridSpec(
                num_scalar_prefetch=0,
                grid=grid,
                in_specs=[
                    pl.BlockSpec((tm, fk_pad), x_map),     # x
                    pl.BlockSpec((tn, fk_pad), w_map),     # W (out, in)
                    pl.BlockSpec((1, tn), v_map),          # bias
                    pl.BlockSpec((1, fk_pad), d_map),      # in_degrees
                ],
                out_specs=pl.BlockSpec((tm, tn), o_map),
            ),
            compiler_params=pltpu.CompilerParams(
                dimension_semantics=("parallel", "parallel"),
                vmem_limit_bytes=cfg["vmem_limit"],
            ),
        )(x_p, w_p, b_p, deg_p)
    else:
        grid = (grid_i, grid_j, fk_pad // tk)
        kernel = partial(_masked_ffwd_ktiled_kernel, max_deg=max_deg,
                         min_deg=min_deg, compute_dtype=compute_dtype)
        out = pl.pallas_call(
            kernel,
            out_shape=jax.ShapeDtypeStruct((b_pad, fn_pad), inputs.dtype),
            grid_spec=pltpu.PrefetchScalarGridSpec(
                num_scalar_prefetch=0,
                grid=grid,
                in_specs=[
                    pl.BlockSpec((tm, tk), lambda i, j, k: (i, k)),   # x
                    pl.BlockSpec((tn, tk), lambda i, j, k: (j, k)),   # W
                    pl.BlockSpec((1, tn), lambda i, j, k: (0, j)),    # bias
                    pl.BlockSpec((1, tk), lambda i, j, k: (0, k)),    # in_degrees
                ],
                out_specs=pl.BlockSpec((tm, tn), lambda i, j, k: (i, j)),
                scratch_shapes=[pltpu.VMEM((tm, tn), jnp.float32)],
            ),
            compiler_params=pltpu.CompilerParams(
                dimension_semantics=("parallel", "parallel", "arbitrary"),
                vmem_limit_bytes=cfg["vmem_limit"],
            ),
        )(x_p, w_p, b_p, deg_p)

    if b_pad != B or fn_pad != F:
        out = out[:B, :F]
    return out


# ------------------------------- reference -----------------------------------

def _reference(x, w, b, in_degrees, autoregressive_features):
    max_ = max(1, autoregressive_features - 1)
    min_ = min(1, autoregressive_features - 1)
    out_deg = np.arange(w.shape[0], dtype=np.int64) % max_ + min_
    mask = (out_deg[:, None] >= np.asarray(in_degrees)[None, :]).astype(np.float32)
    return jnp.maximum(x @ (w * jnp.asarray(mask)).T + b, 0.0)


# --------------------------------- main ---------------------------------------

def _run_case(batch, features, key, *, use_bf16, rtol, atol, **kw):
    autoregressive_features = features
    in_degrees = np.arange(1, features + 1, dtype=np.int32)  # _get_input_degrees

    kx, kwt, kb = jax.random.split(key, 3)
    bound = 1.0 / np.sqrt(features)
    w = jax.random.uniform(kwt, (features, features),
                           minval=-bound, maxval=bound, dtype=jnp.float32)
    b = jax.random.uniform(kb, (features,),
                           minval=-bound, maxval=bound, dtype=jnp.float32)
    x = jax.random.normal(kx, (batch, features), dtype=jnp.float32)

    out = masked_feedforward_block(x, w, b, in_degrees, autoregressive_features,
                                   use_bf16=use_bf16, **kw)
    out = jax.block_until_ready(out)

    ref = _reference(x, w, b, in_degrees, autoregressive_features)
    np.testing.assert_allclose(np.asarray(out), np.asarray(ref), rtol=rtol, atol=atol)


if __name__ == "__main__":
    key = jax.random.PRNGKey(0)
    k1, k2, k3 = jax.random.split(key, 3)

    # Small module-consistent shape, exact f32 MXU path (single tile).
    _run_case(batch=8, features=32, key=k1, use_bf16=False, rtol=1e-5, atol=1e-5)

    # bf16 MXU path, resident-weight full-K kernel with multiple N tiles.
    _run_case(batch=16, features=256, key=k2, use_bf16=True, rtol=3e-2, atol=3e-2)

    # Forced K-tiled accumulator path (block_k < F) exercising init/finalize.
    _run_case(batch=16, features=384, key=k3, use_bf16=True, rtol=3e-2, atol=3e-2,
              block_k=128)

    # TODO(synk): training-mode dropout (p=0.0 default -> identity) would need
    # pltpu.prng_* in-kernel; optional BatchNorm1d (use_batch_norm=False default)
    # and random_mask=True degree sampling are not implemented.
    print("KERNEL_OK")
</pallas_src>

<mosaic_0001>
module attributes {stable_mosaic.version = 11 : i64} {
  func.func @_masked_ffwd_fullk_kernel(%arg0: i32, %arg1: i32, %arg2: memref<8x128xf32, #tpu.memory_space<vmem>>, %arg3: memref<128x128xf32, #tpu.memory_space<vmem>>, %arg4: memref<1x128xf32, #tpu.memory_space<vmem>>, %arg5: memref<1x128xi32, #tpu.memory_space<vmem>>, %arg6: memref<8x128xf32, #tpu.memory_space<vmem>>) attributes {dimension_semantics = [#tpu.dimension_semantics<parallel>, #tpu.dimension_semantics<parallel>], iteration_bounds = array<i64: 1, 1>, scalar_prefetch = 0 : i64, scratch_operands = 0 : i64, tpu.core_type = #tpu.core_type<tc>, window_params = [{transform_indices = @transform_0, window_bounds = array<i64: 8, 128>}, {transform_indices = @transform_1, window_bounds = array<i64: 128, 128>}, {transform_indices = @transform_2, window_bounds = array<i64: 1, 128>}, {pipeline_mode = #tpu.pipeline_mode<synchronous>, transform_indices = @transform_3, window_bounds = array<i64: 1, 128>}, {transform_indices = @transform_4, window_bounds = array<i64: 8, 128>}]} {
    %c128_i32 = arith.constant 128 : i32
    %0 = arith.muli %arg0, %c128_i32 : i32
    %1 = tpu.iota {dimensions = array<i32: 0>} : vector<128x1xi32>
    %2 = vector.broadcast %0 : i32 to vector<128x1xi32>
    %3 = arith.addi %2, %1 : vector<128x1xi32>
    %c31_i32 = arith.constant 31 : i32
    %c0_i32 = arith.constant 0 : i32
    %4 = arith.cmpi eq, %c31_i32, %c0_i32 : i32
    %c1_i32 = arith.constant 1 : i32
    %5 = arith.select %4, %c1_i32, %c31_i32 : i32
    %6 = vector.broadcast %5 : i32 to vector<128x1xi32>
    %7 = arith.remsi %3, %6 : vector<128x1xi32>
    %c0_i32_0 = arith.constant 0 : i32
    %8 = vector.broadcast %c0_i32_0 : i32 to vector<128x1xi32>
    %9 = arith.cmpi ne, %7, %8 : vector<128x1xi32>
    %c0_i32_1 = arith.constant 0 : i32
    %10 = vector.broadcast %c0_i32_1 : i32 to vector<128x1xi32>
    %11 = arith.cmpi slt, %7, %10 : vector<128x1xi32>
    %c0_i32_2 = arith.constant 0 : i32
    %12 = arith.cmpi slt, %5, %c0_i32_2 : i32
    %13 = vector.broadcast %12 : i1 to vector<128x1xi1>
    %14 = vector.broadcast %13 : vector<128x1xi1> to vector<128x1xi1>
    %15 = arith.xori %11, %14 : vector<128x1xi1>
    %16 = arith.andi %15, %9 : vector<128x1xi1>
    %17 = vector.broadcast %5 : i32 to vector<128x1xi32>
    %18 = arith.addi %7, %17 : vector<128x1xi32>
    %19 = arith.select %16, %18, %7 : vector<128x1xi1>, vector<128x1xi32>
    %c1_i32_3 = arith.constant 1 : i32
    %20 = vector.broadcast %c1_i32_3 : i32 to vector<128x1xi32>
    %21 = arith.addi %19, %20 : vector<128x1xi32>
    %c0 = arith.constant 0 : index
    %c0_4 = arith.constant 0 : index
    %22 = vector.load %arg5[%c0, %c0_4] : memref<1x128xi32, #tpu.memory_space<vmem>>, vector<1x128xi32>
    %23 = vector.broadcast %21 : vector<128x1xi32> to vector<128x128xi32>
    %24 = vector.broadcast %22 : vector<1x128xi32> to vector<128x128xi32>
    %25 = arith.cmpi sge, %23, %24 : vector<128x128xi32>
    %c0_5 = arith.constant 0 : index
    %c0_6 = arith.constant 0 : index
    %26 = vector.load %arg3[%c0_5, %c0_6] : memref<128x128xf32, #tpu.memory_space<vmem>>, vector<128x128xf32>
    %cst = arith.constant 0.000000e+00 : f32
    %27 = vector.broadcast %cst : f32 to vector<128x128xf32>
    %28 = arith.select %25, %26, %27 : vector<128x128xi1>, vector<128x128xf32>
    %c0_7 = arith.constant 0 : index
    %c0_8 = arith.constant 0 : index
    %29 = vector.load %arg2[%c0_7, %c0_8] : memref<8x128xf32, #tpu.memory_space<vmem>>, vector<8x128xf32>
    %cst_9 = arith.constant dense<0.000000e+00> : vector<8x128xf32>
    %30 = tpu.matmul %29, %28, %cst_9 {dimension_numbers = #tpu.dot_dimension_numbers<[1], [1], [0], [0], [0, 0, 1, 0], [], []>} : vector<8x128xf32>, vector<128x128xf32>, vector<8x128xf32> -> vector<8x128xf32>
    %c0_10 = arith.constant 0 : index
    %c0_11 = arith.constant 0 : index
    %31 = vector.load %arg4[%c0_10, %c0_11] : memref<1x128xf32, #tpu.memory_space<vmem>>, vector<1x128xf32>
    %32 = vector.broadcast %31 : vector<1x128xf32> to vector<8x128xf32>
    %33 = arith.addf %30, %32 : vector<8x128xf32>
    %cst_12 = arith.constant 0.000000e+00 : f32
    %34 = vector.broadcast %cst_12 : f32 to vector<8x128xf32>
    %35 = arith.maximumf %33, %34 : vector<8x128xf32>
    %c0_13 = arith.constant 0 : index
    %c0_14 = arith.constant 0 : index
    %36 = vector.load %arg6[%c0_13, %c0_14] : memref<8x128xf32, #tpu.memory_space<vmem>>, vector<8x128xf32>
    tpu.vector_store %arg6[%c0_13, %c0_14], %35 {strides = array<i32>} : memref<8x128xf32, #tpu.memory_space<vmem>>, vector<8x128xf32>,
    return
  }
  func.func @transform_0(%arg0: i32, %arg1: i32) -> (i32, i32) {
    %c0_i32 = arith.constant 0 : i32
    %c0_i32_0 = arith.constant 0 : i32
    return %arg1, %c0_i32 : i32, i32
  }
  func.func @transform_1(%arg0: i32, %arg1: i32) -> (i32, i32) {
    %c0_i32 = arith.constant 0 : i32
    %c0_i32_0 = arith.constant 0 : i32
    return %arg0, %c0_i32 : i32, i32
  }
  func.func @transform_2(%arg0: i32, %arg1: i32) -> (i32, i32) {
    %c0_i32 = arith.constant 0 : i32
    %c0_i32_0 = arith.constant 0 : i32
    return %c0_i32, %arg0 : i32, i32
  }
  func.func @transform_3(%arg0: i32, %arg1: i32) -> (i32, i32) {
    %c0_i32 = arith.constant 0 : i32
    %c0_i32_0 = arith.constant 0 : i32
    %c0_i32_1 = arith.constant 0 : i32
    return %c0_i32, %c0_i32_0 : i32, i32
  }
  func.func @transform_4(%arg0: i32, %arg1: i32) -> (i32, i32) {
    %c0_i32 = arith.constant 0 : i32
    return %arg1, %arg0 : i32, i32
  }
}

</mosaic_0001>

<bundles_post_ra>
// kernel: tpu_custom_call.1
= control target key start
LH: loop header
LB: loop body
LE: loop exit
PB: predicated region body
PF: predicated region fallthrough
CT: control target
= control target key end

     0   :  { %9 = vsyncpa [#allocation3], 0  ;;  %s1101_s0 = inlined_call_operand.hbm [shape: f32[8,128], index: 0, kind: input, shape index: {}]   ;;  %s1102_s1 = inlined_call_operand.hbm [shape: f32[128,128], index: 1, kind: input, shape index: {}]   ;;  %s1103_s2 = inlined_call_operand.vmem [shape: f32[1,128], index: 2, kind: input, shape index: {}]   ;;  %s1104_s3 = inlined_call_operand.vmem [shape: s32[1,128], index: 3, kind: input, shape index: {}]   ;;  %s1105_s4 = inlined_call_operand.hbm [shape: f32[8,128], index: 4, kind: output, shape index: {}]  }
   0x1   :  { %10 = vsyncpa [#allocation6], 0 }
   0x2   :  { %11 = vsyncpa [#allocation4], 0  ;;  %s17_s17 = sshll.u32 %s1101_s0, 4  ;;  %s888_s18 = smov [#allocation2]   ;;  %s18_s17 = int_to_ptr.hbm [resolvable:$true] %s17_s17 }
   0x3   :  { %s19_s19 = sshll.u32 %s888_s18, 4  ;;  %s27_s22 = sshll.u32 %s1102_s1, 4  ;;  %s20_s19 = int_to_ptr.vmem [resolvable:$true] %s19_s19  ;;  %s28_s22 = int_to_ptr.hbm [resolvable:$true] %s27_s22 }
   0x4   :  { %22 = dma.hbm_to_vmem [thread:$0]  %s18_s17, 128, %s20_s19, [#allocation3]  }
   0x5   :  { %s889_s23 = smov [#allocation5]   ;;  %s890_s25 = smov 128  }
   0x6   :  { %s29_s24 = sshll.u32 %s889_s23, 4  ;;  %s891_s26 = smov 8   ;;  %s30_s24 = int_to_ptr.vmem [resolvable:$true] %s29_s24 }
   0x7   :  { %35 = dma.hbm_to_vmem [thread:$0]  %s28_s22, 2048, %s30_s24, [#allocation6], %s890_s25, %s890_s25, %s891_s26  }
   0x8   :  { %882 = dma.done.wait [#allocation3], 128  }
   0x9   :  { %883 = vsyncadd [#allocation3], 4294967168 }
   0xa   :  { %884 = dma.done.wait [#allocation6], 2048  }
   0xb   :  { %885 = vsyncadd [#allocation6], 4294965248  ;;  %v49_v0 = vlaneseq  ;;  %v892_v32 = vmov 0   ;;  %s893_s28 = smov [#allocation7]   ;;  %s775_s6 = sshll.u32 %s1105_s4, 4  ;;  %s776_s6 = int_to_ptr.hbm [resolvable:$true] %s775_s6 }
   0xc   :  { %s773_s29 = sshll.u32 %s893_s28, 4  ;;  %s774_s29 = int_to_ptr.vmem [resolvable:$true] %s773_s29 }
   0xd   :  { %v925_v1 = vshrl.u32 %v49_v0, 7 }
   0xf   :  { %v928_v2 = vadd.s32 120, %v925_v1  ;;  %v931_v3 = vadd.s32 112, %v925_v1  ;;  %v934_v4 = vadd.s32 104, %v925_v1  ;;  %v942_v10 = vadd.s32 96, %v925_v1 }
  0x10   :  { %v945_v11 = vadd.s32 88, %v925_v1  ;;  %v948_v12 = vadd.s32 80, %v925_v1 }
  0x11   :  { %v566_v5 = vand.u32 65535, %v928_v2  ;;  %v567_v6 = vshrl.u32 %v928_v2, 16  ;;  %v534_v7 = vand.u32 65535, %v931_v3  ;;  %v535_v8 = vshrl.u32 %v931_v3, 16 }
  0x12   :  { %v502_v9 = vand.u32 65535, %v934_v4  ;;  %v503_v30 = vshrl.u32 %v934_v4, 16  ;;  %v470_v55 = vand.u32 65535, %v942_v10  ;;  %v471_v58 = vshrl.u32 %v942_v10, 16 }
  0x13   :  { %v569_v13 = vmul.u32 2114, %v566_v5  ;;  %v570_v14 = vmul.u32 33825, %v566_v5  ;;  %v571_v15 = vmul.u32 2114, %v567_v6  ;;  %v572_v16 = vmul.u32 33825, %v567_v6 }
  0x14   :  { %v537_v17 = vmul.u32 2114, %v534_v7  ;;  %v538_v18 = vmul.u32 33825, %v534_v7  ;;  %v539_v19 = vmul.u32 2114, %v535_v8  ;;  %v540_v20 = vmul.u32 33825, %v535_v8 }
  0x15   :  { %v573_v21 = vshll.u32 %v570_v14, 16  ;;  %v574_v22 = vshrl.u32 %v570_v14, 16  ;;  %v575_v23 = vshll.u32 %v571_v15, 16  ;;  %v576_v24 = vshrl.u32 %v571_v15, 16 }
  0x16   :  { %v541_v25 = vshll.u32 %v538_v18, 16  ;;  %v542_v26 = vshrl.u32 %v538_v18, 16  ;;  %v543_v27 = vshll.u32 %v539_v19, 16  ;;  %v544_v28 = vshrl.u32 %v539_v19, 16 }
  0x17   :  { %vm577_vm0 = vc.u32 %v569_v13, %v573_v21  ;;  %v579_v29 = vadd.s32 %v573_v21, %v569_v13  ;;  %v505_v31 = vmul.u32 2114, %v502_v9  ;;  %v506_v35 = vmul.u32 33825, %v502_v9 }
  0x18   :  { %v578_v33 = vsel %vm577_vm0, 1, %v892_v32  ;;  %vm545_vm1 = vc.u32 %v537_v17, %v541_v25  ;;  %v547_v34 = vadd.s32 %v541_v25, %v537_v17  ;;  %v507_v44 = vmul.u32 2114, %v503_v30 }
  0x19   :  { %v580_v36 = vadd.s32 %v578_v33, %v572_v16  ;;  %vm581_vm2 = vc.u32 %v579_v29, %v575_v23  ;;  %v583_v37 = vadd.s32 %v579_v29, %v575_v23  ;;  %v546_v38 = vsel %vm545_vm1, 1, %v892_v32 }
  0x1a   :  { %v582_v39 = vsel %vm581_vm2, 1, %v892_v32  ;;  %v548_v40 = vadd.s32 %v546_v38, %v540_v20  ;;  %vm549_vm3 = vc.u32 %v547_v34, %v543_v27  ;;  %v551_v41 = vadd.s32 %v547_v34, %v543_v27 }
  0x1b   :  { %v584_v42 = vadd.s32 %v582_v39, %v580_v36  ;;  %vm587_vm4 = vc.u32 %v583_v37, 2216757314  ;;  %v550_v43 = vsel %vm549_vm3, 1, %v892_v32  ;;  %v508_v47 = vmul.u32 33825, %v503_v30  ;;  %v970_v37 = vld [vmem:[%s1104_s3] ss:$0 sm:$0xff] }
  0x1c   :  { %v588_v45 = vsel %vm587_vm4, 1, %v892_v32  ;;  %v552_v46 = vadd.s32 %v550_v43, %v548_v40  ;;  %vm555_vm5 = vc.u32 %v551_v41, 2216757314  ;;  %v509_v50 = vshll.u32 %v506_v35, 16 }
  0x1d   :  { %v585_v48 = vadd.s32 %v584_v42, %v574_v22  ;;  %v556_v49 = vsel %vm555_vm5, 1, %v892_v32  ;;  %v510_v51 = vshrl.u32 %v506_v35, 16  ;;  %v511_v53 = vshll.u32 %v507_v44, 16  ;;  %v724_v42 = vld [vmem:[#allocation5 + $0x78] sm:$0xff] }
  0x1e   :  { %v553_v52 = vadd.s32 %v552_v46, %v542_v26  ;;  %v512_v54 = vshrl.u32 %v507_v44, 16  ;;  %vm513_vm6 = vc.u32 %v505_v31, %v509_v50  ;;  %v515_v57 = vadd.s32 %v509_v50, %v505_v31 }
  0x1f   :  { %v586_v56 = vadd.s32 %v585_v48, %v576_v24  ;;  %v514_v60 = vsel %vm513_vm6, 1, %v892_v32  ;;  %v473_v61 = vmul.u32 2114, %v470_v55  ;;  %v474_v62 = vmul.u32 33825, %v470_v55 }
  0x20   :  { %v554_v59 = vadd.s32 %v553_v52, %v544_v28  ;;  %v516_v0 = vadd.s32 %v514_v60, %v508_v47  ;;  %vm517_vm7 = vc.u32 %v515_v57, %v511_v53  ;;  %v519_v5 = vadd.s32 %v515_v57, %v511_v53 }
  0x21   :  { %v589_v63 = vadd.s32 %v588_v45, %v586_v56  ;;  %v518_v7 = vsel %vm517_vm7, 1, %v892_v32  ;;  %v475_v8 = vmul.u32 2114, %v471_v58  ;;  %v476_v9 = vmul.u32 33825, %v471_v58  ;;  %v723_v56 = vld [vmem:[#allocation5 + $0x70] sm:$0xff] }
  0x22   :  { %v557_v6 = vadd.s32 %v556_v49, %v554_v59  ;;  %v520_v14 = vadd.s32 %v518_v7, %v516_v0  ;;  %vm523_vm8 = vc.u32 %v519_v5, 2216757314  ;;  %v477_v15 = vshll.u32 %v474_v62, 16 }
  0x23   :  { %v590_v13 = vshrl.u32 %v589_v63, 4  ;;  %v524_v17 = vsel %vm523_vm8, 1, %v892_v32  ;;  %v478_v18 = vshrl.u32 %v474_v62, 16  ;;  %v479_v19 = vshll.u32 %v475_v8, 16 }
  0x24   :  { %v558_v16 = vshrl.u32 %v557_v6, 4  ;;  %v521_v21 = vadd.s32 %v520_v14, %v510_v51  ;;  %v480_v22 = vshrl.u32 %v475_v8, 16  ;;  %vm481_vm9 = vc.u32 %v473_v61, %v477_v15 }
  0x25   :  { %v591_v20 = vmul.u32 31, %v590_v13  ;;  %v482_v24 = vsel %vm481_vm9, 1, %v892_v32  ;;  %v483_v25 = vadd.s32 %v477_v15, %v473_v61  ;;  %v438_v26 = vand.u32 65535, %v945_v11 }
  0x26   :  { %v559_v23 = vmul.u32 31, %v558_v16  ;;  %v522_v28 = vadd.s32 %v521_v21, %v512_v54  ;;  %v484_v29 = vadd.s32 %v482_v24, %v476_v9  ;;  %v439_v30 = vshrl.u32 %v945_v11, 16  ;;  %v722_v9 = vld [vmem:[#allocation5 + $0x68] sm:$0xff] }
  0x27   :  { %v592_v27 = vsub.s32 %v928_v2, %v591_v20  ;;  %vm485_vm10 = vc.u32 %v483_v25, %v479_v19  ;;  %v487_v33 = vadd.s32 %v483_v25, %v479_v19  ;;  %v441_v34 = vmul.u32 2114, %v438_v26 }
  0x28   :  { %v560_v31 = vsub.s32 %v931_v3, %v559_v23  ;;  %v525_v36 = vadd.s32 %v524_v17, %v522_v28  ;;  %v486_v38 = vsel %vm485_vm10, 1, %v892_v32  ;;  %v442_v45 = vmul.u32 33825, %v438_v26 }
  0x29   :  { %vm610_vm11 = vcmp.ne.s32.totalorder %v592_v27, 0  ;;  %vm626_vm12 = vcmp.lt.s32.totalorder %v592_v27, 0  ;;  %v658_v35 = vadd.s32 31, %v592_v27  ;;  %v488_v40 = vadd.s32 %v486_v38, %v484_v29 }
  0x2a   :  { %vm642_vm13 = vmand %vm626_vm12, %vm610_vm11  ;;  %vm609_vm14 = vcmp.ne.s32.totalorder %v560_v31, 0  ;;  %vm625_vm15 = vcmp.lt.s32.totalorder %v560_v31, 0  ;;  %v657_v2 = vadd.s32 31, %v560_v31  ;;  %v526_v3 = vshrl.u32 %v525_v36, 4 }
  0x2b   :  { %v674_v39 = vsel %vm642_vm13, %v658_v35, %v592_v27  ;;  %vm641_vm0 = vmand %vm625_vm15, %vm609_vm14  ;;  %vm491_vm1 = vc.u32 %v487_v33, 2216757314  ;;  %v489_v48 = vadd.s32 %v488_v40, %v478_v18  ;;  %v443_v49 = vmul.u32 2114, %v439_v30 }
  0x2c   :  { %v690_v41 = vadd.s32 1, %v674_v39  ;;  %v673_v43 = vsel %vm641_vm0, %v657_v2, %v560_v31  ;;  %v492_v44 = vsel %vm491_vm1, 1, %v892_v32  ;;  %v527_v47 = vmul.u32 31, %v526_v3  ;;  %v721_v39 = vld [vmem:[#allocation5 + $0x60] sm:$0xff] }
  0x2d   :  { %v689_v46 = vadd.s32 1, %v673_v43  ;;  %v444_v50 = vmul.u32 33825, %v439_v30  ;;  %v445_v51 = vshll.u32 %v442_v45, 16  ;;  %v446_v52 = vshrl.u32 %v442_v45, 16 }
  0x2e   :  { %vm708_vm2 = vcmp.ge.s32.totalorder %v690_v41, %v970_v37  ;;  %v528_v53 = vsub.s32 %v934_v4, %v527_v47  ;;  %v490_v54 = vadd.s32 %v489_v48, %v480_v22  ;;  %v447_v55 = vshll.u32 %v443_v49, 16 }
  0x2f   :  { %786 = vmatpush.xpose.msk.msra.mxu0 %vm708_vm2, %v724_v42  ;;  %vm707_vm3 = vcmp.ge.s32.totalorder %v689_v46, %v970_v37  ;;  %v448_v57 = vshrl.u32 %v443_v49, 16  ;;  %vm449_vm4 = vc.u32 %v441_v34, %v445_v51  ;;  %v451_v58 = vadd.s32 %v445_v51, %v441_v34 }
  0x30   :  { %v406_v59 = vand.u32 65535, %v948_v12  ;;  %vm608_vm5 = vcmp.ne.s32.totalorder %v528_v53, 0  ;;  %vm624_vm6 = vcmp.lt.s32.totalorder %v528_v53, 0  ;;  %v656_v60 = vadd.s32 31, %v528_v53 }
  0x31   :  { %v493_v61 = vadd.s32 %v492_v44, %v490_v54  ;;  %vm640_vm7 = vmand %vm624_vm6, %vm608_vm5  ;;  %v450_v62 = vsel %vm449_vm4, 1, %v892_v32  ;;  %vm453_vm8 = vc.u32 %v451_v58, %v447_v55  ;;  %v455_v63 = vadd.s32 %v451_v58, %v447_v55 }
  0x32   :  { %v407_v0 = vshrl.u32 %v948_v12, 16  ;;  %v672_v4 = vsel %vm640_vm7, %v656_v60, %v528_v53  ;;  %v452_v6 = vadd.s32 %v450_v62, %v444_v50  ;;  %v454_v7 = vsel %vm453_vm8, 1, %v892_v32 }
  0x33   :  { %787 = vmatpush.xpose.msk.msra.mxu0 %vm707_vm3, %v723_v56  ;;  %v494_v5 = vshrl.u32 %v493_v61, 4  ;;  %v688_v8 = vadd.s32 1, %v672_v4  ;;  %vm459_vm9 = vc.u32 %v455_v63, 2216757314  ;;  %v409_v13 = vmul.u32 2114, %v406_v59 }
  0x34   :  { %v410_v14 = vmul.u32 33825, %v406_v59  ;;  %v456_v16 = vadd.s32 %v454_v7, %v452_v6  ;;  %v460_v17 = vsel %vm459_vm9, 1, %v892_v32  ;;  %v411_v18 = vmul.u32 2114, %v407_v0 }
  0x35   :  { %v495_v15 = vmul.u32 31, %v494_v5  ;;  %vm706_vm10 = vcmp.ge.s32.totalorder %v688_v8, %v970_v37  ;;  %v412_v19 = vmul.u32 33825, %v407_v0  ;;  %v987_v27 = vadd.s32 72, %v925_v1 }
  0x36   :  { %v413_v20 = vshll.u32 %v410_v14, 16  ;;  %v414_v21 = vshrl.u32 %v410_v14, 16  ;;  %v457_v23 = vadd.s32 %v456_v16, %v446_v52  ;;  %v415_v24 = vshll.u32 %v411_v18, 16  ;;  %v720_v14 = vld [vmem:[#allocation5 + $0x58] sm:$0xff] }
  0x37   :  { %788 = vmatpush.xpose.msk.msra.mxu0 %vm706_vm10, %v722_v9  ;;  %v496_v22 = vsub.s32 %v942_v10, %v495_v15  ;;  %v416_v25 = vshrl.u32 %v411_v18, 16  ;;  %v990_v28 = vadd.s32 64, %v925_v1  ;;  %v374_v33 = vand.u32 65535, %v987_v27 }
  0x38   :  { %vm417_vm11 = vc.u32 %v409_v13, %v413_v20  ;;  %v419_v26 = vadd.s32 %v413_v20, %v409_v13  ;;  %v458_v30 = vadd.s32 %v457_v23, %v448_v57  ;;  %v375_v3 = vshrl.u32 %v987_v27, 16 }
  0x39   :  { %vm607_vm12 = vcmp.ne.s32.totalorder %v496_v22, 0  ;;  %vm623_vm13 = vcmp.lt.s32.totalorder %v496_v22, 0  ;;  %v655_v29 = vadd.s32 31, %v496_v22  ;;  %v418_v31 = vsel %vm417_vm11, 1, %v892_v32 }
  0x3a   :  { %vm639_vm14 = vmand %vm623_vm13, %vm607_vm12  ;;  %vm421_vm15 = vc.u32 %v419_v26, %v415_v24  ;;  %v423_v10 = vadd.s32 %v419_v26, %v415_v24  ;;  %v461_v35 = vadd.s32 %v460_v17, %v458_v30  ;;  %v420_v36 = vadd.s32 %v418_v31, %v412_v19 }
  0x3b   :  { %v671_v34 = vsel %vm639_vm14, %v655_v29, %v496_v22  ;;  %v422_v2 = vsel %vm421_vm15, 1, %v892_v32  ;;  %v377_v40 = vmul.u32 2114, %v374_v33  ;;  %v378_v44 = vmul.u32 33825, %v374_v33 }
  0x3c   :  { %v687_v38 = vadd.s32 1, %v671_v34  ;;  %vm427_vm0 = vc.u32 %v423_v10, 2216757314  ;;  %v462_v41 = vshrl.u32 %v461_v35, 4  ;;  %v424_v42 = vadd.s32 %v422_v2, %v420_v36 }
  0x3d   :  { %v428_v43 = vsel %vm427_vm0, 1, %v892_v32  ;;  %v379_v45 = vmul.u32 2114, %v375_v3  ;;  %v380_v46 = vmul.u32 33825, %v375_v3  ;;  %v342_v47 = vand.u32 65535, %v990_v28 }
  0x3e   :  { %vm705_vm1 = vcmp.ge.s32.totalorder %v687_v38, %v970_v37  ;;  %v463_v48 = vmul.u32 31, %v462_v41  ;;  %v425_v49 = vadd.s32 %v424_v42, %v414_v21  ;;  %v381_v50 = vshll.u32 %v378_v44, 16 }
  0x3f   :  { %789 = vmatpush.xpose.msk.msra.mxu0 %vm705_vm1, %v721_v39  ;;  %v382_v51 = vshrl.u32 %v378_v44, 16  ;;  %v383_v52 = vshll.u32 %v379_v45, 16  ;;  %v384_v53 = vshrl.u32 %v379_v45, 16  ;;  %v343_v54 = vshrl.u32 %v990_v28, 16 }
  0x40   :  { %v345_v55 = vmul.u32 2114, %v342_v47  ;;  %v464_v56 = vsub.s32 %v945_v11, %v463_v48  ;;  %v426_v57 = vadd.s32 %v425_v49, %v416_v25  ;;  %vm385_vm2 = vc.u32 %v377_v40, %v381_v50 }
  0x41   :  { %v387_v58 = vadd.s32 %v381_v50, %v377_v40  ;;  %v386_v59 = vsel %vm385_vm2, 1, %v892_v32  ;;  %v346_v60 = vmul.u32 33825, %v342_v47  ;;  %v347_v61 = vmul.u32 2114, %v343_v54  ;;  %v719_v40 = vld [vmem:[#allocation5 + $0x50] sm:$0xff] }
  0x42   :  { %v348_v62 = vmul.u32 33825, %v343_v54  ;;  %vm606_vm3 = vcmp.ne.s32.totalorder %v464_v56, 0  ;;  %vm622_vm4 = vcmp.lt.s32.totalorder %v464_v56, 0  ;;  %v654_v63 = vadd.s32 31, %v464_v56 }
  0x43   :  { %v429_v0 = vadd.s32 %v428_v43, %v426_v57  ;;  %vm638_vm5 = vmand %vm622_vm4, %vm606_vm3  ;;  %v388_v4 = vadd.s32 %v386_v59, %v380_v46  ;;  %vm389_vm6 = vc.u32 %v387_v58, %v383_v52  ;;  %v391_v5 = vadd.s32 %v387_v58, %v383_v52 }
  0x44   :  { %v349_v6 = vshll.u32 %v346_v60, 16  ;;  %v670_v7 = vsel %vm638_vm5, %v654_v63, %v464_v56  ;;  %v390_v11 = vsel %vm389_vm6, 1, %v892_v32  ;;  %v350_v9 = vshrl.u32 %v346_v60, 16 }
  0x45   :  { %v430_v8 = vshrl.u32 %v429_v0, 4  ;;  %v686_v13 = vadd.s32 1, %v670_v7  ;;  %v392_v15 = vadd.s32 %v390_v11, %v388_v4  ;;  %vm395_vm7 = vc.u32 %v391_v5, 2216757314 }
  0x46   :  { %v351_v16 = vshll.u32 %v347_v61, 16  ;;  %v396_v18 = vsel %vm395_vm7, 1, %v892_v32  ;;  %v352_v19 = vshrl.u32 %v347_v61, 16  ;;  %vm353_vm8 = vc.u32 %v345_v55, %v349_v6 }
  0x47   :  { %v431_v17 = vmul.u32 31, %v430_v8  ;;  %vm704_vm9 = vcmp.ge.s32.totalorder %v686_v13, %v970_v37  ;;  %v393_v20 = vadd.s32 %v392_v15, %v382_v51  ;;  %v354_v21 = vsel %vm353_vm8, 1, %v892_v32 }
  0x48   :  { %v355_v22 = vadd.s32 %v349_v6, %v345_v55  ;;  %790 = vmatpush.xpose.msk.msra.mxu0 %vm704_vm9, %v720_v14  ;;  %v356_v24 = vadd.s32 %v354_v21, %v348_v62  ;;  %v1008_v25 = vadd.s32 56, %v925_v1  ;;  %v1011_v26 = vadd.s32 48, %v925_v1 }
  0x49   :  { %v432_v23 = vsub.s32 %v948_v12, %v431_v17  ;;  %v394_v29 = vadd.s32 %v393_v20, %v384_v53  ;;  %v1014_v31 = vadd.s32 40, %v925_v1 }
  0x4a   :  { %vm357_vm10 = vc.u32 %v355_v22, %v351_v16  ;;  %v359_v30 = vadd.s32 %v355_v22, %v351_v16  ;;  %v310_v35 = vand.u32 65535, %v1008_v25  ;;  %v311_v38 = vshrl.u32 %v1008_v25, 16 }
  0x4b   :  { %vm605_vm11 = vcmp.ne.s32.totalorder %v432_v23, 0  ;;  %vm621_vm12 = vcmp.lt.s32.totalorder %v432_v23, 0  ;;  %v653_v10 = vadd.s32 31, %v432_v23  ;;  %v358_v33 = vsel %vm357_vm10, 1, %v892_v32 }
  0x4c   :  { %vm637_vm13 = vmand %vm621_vm12, %vm605_vm11  ;;  %v397_v12 = vadd.s32 %v396_v18, %v394_v29  ;;  %v360_v34 = vadd.s32 %v358_v33, %v356_v24  ;;  %vm363_vm14 = vc.u32 %v359_v30, 2216757314  ;;  %v278_v39 = vand.u32 65535, %v1011_v26 }
  0x4d   :  { %v669_v36 = vsel %vm637_vm13, %v653_v10, %v432_v23  ;;  %v364_v2 = vsel %vm363_vm14, 1, %v892_v32  ;;  %v313_v43 = vmul.u32 2114, %v310_v35  ;;  %v314_v44 = vmul.u32 33825, %v310_v35 }
  0x4e   :  { %v685_v3 = vadd.s32 1, %v669_v36  ;;  %v398_v41 = vshrl.u32 %v397_v12, 4  ;;  %v361_v42 = vadd.s32 %v360_v34, %v350_v9  ;;  %v315_v45 = vmul.u32 2114, %v311_v38  ;;  %v718_v9 = vld [vmem:[#allocation5 + $0x48] sm:$0xff]  ;;  %v717_v34 = vld [vmem:[#allocation5 + $0x40] sm:$0xff] }
  0x4f   :  { %v316_v46 = vmul.u32 33825, %v311_v38  ;;  %v279_v47 = vshrl.u32 %v1011_v26, 16  ;;  %v281_v50 = vmul.u32 2114, %v278_v39  ;;  %v317_v51 = vshll.u32 %v314_v44, 16 }
  0x50   :  { %vm703_vm15 = vcmp.ge.s32.totalorder %v685_v3, %v970_v37  ;;  %v399_v48 = vmul.u32 31, %v398_v41  ;;  %v362_v49 = vadd.s32 %v361_v42, %v352_v19  ;;  %v318_v52 = vshrl.u32 %v314_v44, 16 }
  0x51   :  { %791 = vmatpush.xpose.msk.msra.mxu0 %vm703_vm15, %v719_v40  ;;  %v319_v53 = vshll.u32 %v315_v45, 16  ;;  %v320_v54 = vshrl.u32 %v315_v45, 16  ;;  %v282_v57 = vmul.u32 33825, %v278_v39  ;;  %v1024_v58 = vmul.u32 2114, %v279_v47 }
  0x52   :  { %v400_v55 = vsub.s32 %v987_v27, %v399_v48  ;;  %v365_v56 = vadd.s32 %v364_v2, %v362_v49  ;;  %vm321_vm0 = vc.u32 %v313_v43, %v317_v51  ;;  %v323_v59 = vadd.s32 %v317_v51, %v313_v43 }
  0x53   :  { %v284_v60 = vmul.u32 33825, %v279_v47  ;;  %v246_v61 = vand.u32 65535, %v1014_v31  ;;  %v322_v0 = vsel %vm321_vm0, 1, %v892_v32  ;;  %v285_v5 = vshll.u32 %v282_v57, 16 }
  0x54   :  { %vm604_vm1 = vcmp.ne.s32.totalorder %v400_v55, 0  ;;  %vm620_vm2 = vcmp.lt.s32.totalorder %v400_v55, 0  ;;  %v652_v62 = vadd.s32 31, %v400_v55  ;;  %v366_v63 = vshrl.u32 %v365_v56, 4 }
  0x55   :  { %vm636_vm3 = vmand %vm620_vm2, %vm604_vm1  ;;  %vm325_vm4 = vc.u32 %v323_v59, %v319_v53  ;;  %v327_v4 = vadd.s32 %v323_v59, %v319_v53  ;;  %v324_v7 = vadd.s32 %v322_v0, %v316_v46  ;;  %v286_v13 = vshrl.u32 %v282_v57, 16 }
  0x56   :  { %v668_v27 = vsel %vm636_vm3, %v652_v62, %v400_v55  ;;  %v367_v6 = vmul.u32 31, %v366_v63  ;;  %v326_v8 = vsel %vm325_vm4, 1, %v892_v32  ;;  %v287_v14 = vshll.u32 %v1024_v58, 16 }
  0x57   :  { %v684_v11 = vadd.s32 1, %v668_v27  ;;  %vm331_vm5 = vc.u32 %v327_v4, 2216757314  ;;  %v328_v16 = vadd.s32 %v326_v8, %v324_v7  ;;  %v288_v18 = vshrl.u32 %v1024_v58, 16 }
  0x58   :  { %v368_v15 = vsub.s32 %v990_v28, %v367_v6  ;;  %v332_v17 = vsel %vm331_vm5, 1, %v892_v32  ;;  %vm289_vm7 = vc.u32 %v281_v50, %v285_v5  ;;  %v291_v19 = vadd.s32 %v285_v5, %v281_v50 }
  0x59   :  { %vm702_vm6 = vcmp.ge.s32.totalorder %v684_v11, %v970_v37  ;;  %v247_v20 = vshrl.u32 %v1014_v31, 16  ;;  %v329_v22 = vadd.s32 %v328_v16, %v318_v52  ;;  %v290_v23 = vsel %vm289_vm7, 1, %v892_v32 }
  0x5a   :  { %792 = vmatpush.xpose.msk.msra.mxu0 %vm702_vm6, %v718_v9  ;;  %vm603_vm8 = vcmp.ne.s32.totalorder %v368_v15, 0  ;;  %vm619_vm9 = vcmp.lt.s32.totalorder %v368_v15, 0  ;;  %v651_v21 = vadd.s32 31, %v368_v15  ;;  %vm293_vm11 = vc.u32 %v291_v19, %v287_v14 }
  0x5b   :  { %vm635_vm10 = vmand %vm619_vm9, %vm603_vm8  ;;  %v295_v28 = vadd.s32 %v291_v19, %v287_v14  ;;  %v249_v24 = vmul.u32 2114, %v246_v61  ;;  %v330_v30 = vadd.s32 %v329_v22, %v320_v54  ;;  %v292_v10 = vadd.s32 %v290_v23, %v284_v60  ;;  %v716_v14 = vld [vmem:[#allocation5 + $0x38] sm:$0xff] }
  0x5c   :  { %v667_v29 = vsel %vm635_vm10, %v651_v21, %v368_v15  ;;  %v294_v33 = vsel %vm293_vm11, 1, %v892_v32  ;;  %v250_v35 = vmul.u32 33825, %v246_v61  ;;  %v251_v36 = vmul.u32 2114, %v247_v20 }
  0x5d   :  { %v683_v12 = vadd.s32 1, %v667_v29  ;;  %vm299_vm12 = vc.u32 %v295_v28, 2216757314  ;;  %v333_v2 = vadd.s32 %v332_v17, %v330_v30  ;;  %v296_v38 = vadd.s32 %v294_v33, %v292_v10 }
  0x5e   :  { %v300_v39 = vsel %vm299_vm12, 1, %v892_v32  ;;  %v252_v3 = vmul.u32 33825, %v247_v20  ;;  %v253_v40 = vshll.u32 %v250_v35, 16  ;;  %v254_v41 = vshrl.u32 %v250_v35, 16 }
  0x5f   :  { %vm701_vm13 = vcmp.ge.s32.totalorder %v683_v12, %v970_v37  ;;  %v255_v42 = vshll.u32 %v251_v36, 16  ;;  %v334_v43 = vshrl.u32 %v333_v2, 4  ;;  %v297_v44 = vadd.s32 %v296_v38, %v286_v13 }
  0x60   :  { %793 = vmatpush.xpose.msk.msra.mxu0 %vm701_vm13, %v717_v34  ;;  %v256_v45 = vshrl.u32 %v251_v36, 16  ;;  %v1040_v46 = vadd.s32 32, %v925_v1  ;;  %vm257_vm14 = vc.u32 %v249_v24, %v253_v40  ;;  %v259_v47 = vadd.s32 %v253_v40, %v249_v24  ;;  %v715_v36 = vld [vmem:[#allocation5 + $0x30] sm:$0xff] }
  0x61   :  { %v1043_v48 = vadd.s32 24, %v925_v1  ;;  %v1046_v49 = vadd.s32 16, %v925_v1  ;;  %v335_v50 = vmul.u32 31, %v334_v43  ;;  %v298_v51 = vadd.s32 %v297_v44, %v288_v18 }
  0x62   :  { %v258_v52 = vsel %vm257_vm14, 1, %v892_v32  ;;  %v214_v53 = vand.u32 65535, %v1040_v46  ;;  %vm261_vm15 = vc.u32 %v259_v47, %v255_v42  ;;  %v263_v55 = vadd.s32 %v259_v47, %v255_v42 }
  0x63   :  { %v260_v54 = vadd.s32 %v258_v52, %v252_v3  ;;  %v215_v56 = vshrl.u32 %v1040_v46, 16  ;;  %v336_v57 = vsub.s32 %v1008_v25, %v335_v50  ;;  %v301_v58 = vadd.s32 %v300_v39, %v298_v51 }
  0x64   :  { %v262_v59 = vsel %vm261_vm15, 1, %v892_v32  ;;  %v217_v60 = vmul.u32 2114, %v214_v53  ;;  %vm267_vm0 = vc.u32 %v263_v55, 2216757314  ;;  %v218_v62 = vmul.u32 33825, %v214_v53 }
  0x65   :  { %v264_v61 = vadd.s32 %v262_v59, %v260_v54  ;;  %v219_v63 = vmul.u32 2114, %v215_v56  ;;  %vm602_vm1 = vcmp.ne.s32.totalorder %v336_v57, 0  ;;  %vm618_vm2 = vcmp.lt.s32.totalorder %v336_v57, 0  ;;  %v714_v59 = vld [vmem:[#allocation5 + $0x28] sm:$0xff] }
  0x66   :  { %v650_v0 = vadd.s32 31, %v336_v57  ;;  %v302_v4 = vshrl.u32 %v301_v58, 4  ;;  %vm634_vm3 = vmand %vm618_vm2, %vm602_vm1  ;;  %v268_v27 = vsel %vm267_vm0, 1, %v892_v32  ;;  %v220_v6 = vmul.u32 33825, %v215_v56 }
  0x67   :  { %v265_v5 = vadd.s32 %v264_v61, %v254_v41  ;;  %v221_v7 = vshll.u32 %v218_v62, 16  ;;  %v222_v11 = vshrl.u32 %v218_v62, 16  ;;  %v223_v9 = vshll.u32 %v219_v63, 16 }
  0x68   :  { %v666_v8 = vsel %vm634_vm3, %v650_v0, %v336_v57  ;;  %v303_v25 = vmul.u32 31, %v302_v4  ;;  %v224_v16 = vshrl.u32 %v219_v63, 16  ;;  %v182_v20 = vand.u32 65535, %v1043_v48 }
  0x69   :  { %v682_v13 = vadd.s32 1, %v666_v8  ;;  %v266_v15 = vadd.s32 %v265_v5, %v256_v45  ;;  %vm225_vm4 = vc.u32 %v217_v60, %v221_v7  ;;  %v227_v19 = vadd.s32 %v221_v7, %v217_v60 }
  0x6a   :  { %v304_v17 = vsub.s32 %v1011_v26, %v303_v25  ;;  %v226_v18 = vsel %vm225_vm4, 1, %v892_v32  ;;  %v183_v23 = vshrl.u32 %v1043_v48, 16  ;;  %v185_v30 = vmul.u32 2114, %v182_v20 }
  0x6b   :  { %vm700_vm5 = vcmp.ge.s32.totalorder %v682_v13, %v970_v37  ;;  %v269_v21 = vadd.s32 %v268_v27, %v266_v15  ;;  %v228_v22 = vadd.s32 %v226_v18, %v220_v6  ;;  %vm229_vm8 = vc.u32 %v227_v19, %v223_v9 }
  0x6c   :  { %794 = vmatpush.xpose.msk.msra.mxu0 %vm700_vm5, %v716_v14  ;;  %vm601_vm6 = vcmp.ne.s32.totalorder %v304_v17, 0  ;;  %vm617_vm7 = vcmp.lt.s32.totalorder %v304_v17, 0  ;;  %v649_v28 = vadd.s32 31, %v304_v17  ;;  %v230_v26 = vsel %vm229_vm8, 1, %v892_v32 }
  0x6d   :  { %vm633_vm9 = vmand %vm617_vm7, %vm601_vm6  ;;  %v270_v24 = vshrl.u32 %v269_v21, 4  ;;  %v231_v29 = vadd.s32 %v227_v19, %v223_v9  ;;  %v232_v33 = vadd.s32 %v230_v26, %v228_v22  ;;  %v186_v12 = vmul.u32 33825, %v182_v20 }
  0x6e   :  { %v665_v10 = vsel %vm633_vm9, %v649_v28, %v304_v17  ;;  %v187_v34 = vmul.u32 2114, %v183_v23  ;;  %v188_v3 = vmul.u32 33825, %v183_v23  ;;  %v150_v47 = vand.u32 65535, %v1046_v49 }
  0x6f   :  { %v681_v35 = vadd.s32 1, %v665_v10  ;;  %v271_v2 = vmul.u32 31, %v270_v24  ;;  %vm235_vm10 = vc.u32 %v231_v29, 2216757314  ;;  %v233_v38 = vadd.s32 %v232_v33, %v222_v11 }
  0x70   :  { %v236_v39 = vsel %vm235_vm10, 1, %v892_v32  ;;  %v189_v40 = vshll.u32 %v186_v12, 16  ;;  %v190_v42 = vshrl.u32 %v186_v12, 16  ;;  %v191_v43 = vshll.u32 %v187_v34, 16 }
  0x71   :  { %vm699_vm11 = vcmp.ge.s32.totalorder %v681_v35, %v970_v37  ;;  %v272_v41 = vsub.s32 %v1014_v31, %v271_v2  ;;  %v234_v44 = vadd.s32 %v233_v38, %v224_v16  ;;  %v192_v31 = vshrl.u32 %v187_v34, 16 }
  0x72   :  { %795 = vmatpush.xpose.msk.msra.mxu0 %vm699_vm11, %v715_v36  ;;  %vm193_vm12 = vc.u32 %v185_v30, %v189_v40  ;;  %v195_v45 = vadd.s32 %v189_v40, %v185_v30  ;;  %v151_v57 = vshrl.u32 %v1046_v49, 16  ;;  %v153_v63 = vmul.u32 2114, %v150_v47  ;;  %v713_v30 = vld [vmem:[#allocation5 + $0x20] sm:$0xff] }
  0x73   :  { %vm600_vm13 = vcmp.ne.s32.totalorder %v272_v41, 0  ;;  %vm616_vm14 = vcmp.lt.s32.totalorder %v272_v41, 0  ;;  %v648_v50 = vadd.s32 31, %v272_v41  ;;  %v194_v51 = vsel %vm193_vm12, 1, %v892_v32 }
  0x74   :  { %vm632_vm15 = vmand %vm616_vm14, %vm600_vm13  ;;  %v237_v52 = vadd.s32 %v236_v39, %v234_v44  ;;  %v196_v53 = vadd.s32 %v194_v51, %v188_v3  ;;  %vm197_vm0 = vc.u32 %v195_v45, %v191_v43  ;;  %v199_v54 = vadd.s32 %v195_v45, %v191_v43 }
  0x75   :  { %v664_v55 = vsel %vm632_vm15, %v648_v50, %v272_v41  ;;  %v198_v56 = vsel %vm197_vm0, 1, %v892_v32  ;;  %v154_v0 = vmul.u32 33825, %v150_v47  ;;  %v155_v4 = vmul.u32 2114, %v151_v57 }
  0x76   :  { %v680_v58 = vadd.s32 1, %v664_v55  ;;  %v238_v60 = vshrl.u32 %v237_v52, 4  ;;  %v200_v61 = vadd.s32 %v198_v56, %v196_v53  ;;  %vm203_vm1 = vc.u32 %v199_v54, 2216757314  ;;  %v712_v56 = vld [vmem:[#allocation5 + $0x18] sm:$0xff] }
  0x77   :  { %v204_v62 = vsel %vm203_vm1, 1, %v892_v32  ;;  %v1070_v6 = vadd.s32 8, %v925_v1  ;;  %v156_v7 = vmul.u32 33825, %v151_v57  ;;  %v157_v8 = vshll.u32 %v154_v0, 16 }
  0x78   :  { %vm698_vm2 = vcmp.ge.s32.totalorder %v680_v58, %v970_v37  ;;  %v239_v5 = vmul.u32 31, %v238_v60  ;;  %v201_v27 = vadd.s32 %v200_v61, %v190_v42  ;;  %v158_v25 = vshrl.u32 %v154_v0, 16 }
  0x79   :  { %796 = vmatpush.xpose.msk.msra.mxu0 %vm698_vm2, %v714_v59  ;;  %v159_v11 = vshll.u32 %v155_v4, 16  ;;  %v118_v14 = vand.u32 65535, %v1070_v6  ;;  %v119_v15 = vshrl.u32 %v1070_v6, 16  ;;  %vm161_vm3 = vc.u32 %v153_v63, %v157_v8 }
  0x7a   :  { %v240_v9 = vsub.s32 %v1040_v46, %v239_v5  ;;  %v202_v13 = vadd.s32 %v201_v27, %v192_v31  ;;  %v163_v16 = vadd.s32 %v157_v8, %v153_v63  ;;  %v86_v17 = vand.u32 65535, %v925_v1 }
  0x7b   :  { %v87_v18 = vshrl.u32 %v925_v1, 16  ;;  %v162_v21 = vsel %vm161_vm3, 1, %v892_v32  ;;  %v121_v22 = vmul.u32 2114, %v118_v14  ;;  %v122_v10 = vmul.u32 33825, %v118_v14 }
  0x7c   :  { %vm599_vm4 = vcmp.ne.s32.totalorder %v240_v9, 0  ;;  %vm615_vm5 = vcmp.lt.s32.totalorder %v240_v9, 0  ;;  %v647_v19 = vadd.s32 31, %v240_v9  ;;  %v205_v20 = vadd.s32 %v204_v62, %v202_v13 }
  0x7d   :  { %vm631_vm6 = vmand %vm615_vm5, %vm599_vm4  ;;  %vm165_vm7 = vc.u32 %v163_v16, %v159_v11  ;;  %v167_v46 = vadd.s32 %v163_v16, %v159_v11  ;;  %v164_v24 = vadd.s32 %v162_v21, %v156_v7  ;;  %v123_v33 = vmul.u32 2114, %v119_v15 }
  0x7e   :  { %v663_v23 = vsel %vm631_vm6, %v647_v19, %v240_v9  ;;  %v206_v28 = vshrl.u32 %v205_v20, 4  ;;  %v166_v26 = vsel %vm165_vm7, 1, %v892_v32  ;;  %v160_v34 = vshrl.u32 %v155_v4, 16 }
  0x7f   :  { %v679_v29 = vadd.s32 1, %v663_v23  ;;  %vm171_vm8 = vc.u32 %v167_v46, 2216757314  ;;  %v168_v35 = vadd.s32 %v166_v26, %v164_v24  ;;  %v125_v2 = vshll.u32 %v122_v10, 16 }
  0x80   :  { %v207_v12 = vmul.u32 31, %v206_v28  ;;  %v172_v36 = vsel %vm171_vm8, 1, %v892_v32  ;;  %v127_v38 = vshll.u32 %v123_v33, 16  ;;  %v124_v40 = vmul.u32 33825, %v119_v15 }
  0x81   :  { %vm697_vm9 = vcmp.ge.s32.totalorder %v679_v29, %v970_v37  ;;  %v169_v3 = vadd.s32 %v168_v35, %v158_v25  ;;  %v126_v41 = vshrl.u32 %v122_v10, 16  ;;  %vm129_vm10 = vc.u32 %v121_v22, %v125_v2 }
  0x82   :  { %797 = vmatpush.xpose.msk.msra.mxu0 %vm697_vm9, %v713_v30  ;;  %v208_v39 = vsub.s32 %v1043_v48, %v207_v12  ;;  %v131_v42 = vadd.s32 %v125_v2, %v121_v22  ;;  %v90_v43 = vmul.u32 33825, %v86_v17  ;;  %v91_v44 = vmul.u32 2114, %v87_v18  ;;  %v711_v22 = vld [vmem:[#allocation5 + $0x10] sm:$0xff]  ;;  %v710_v12 = vld [vmem:[#allocation5 + $0x8] sm:$0xff]  ;;  %v741_v2 = vld [vmem:[#allocation2] sm:$0xff] }
  0x83   :  { %v170_v47 = vadd.s32 %v169_v3, %v160_v34  ;;  %v130_v50 = vsel %vm129_vm10, 1, %v892_v32  ;;  %v89_v52 = vmul.u32 2114, %v86_v17  ;;  %v128_v57 = vshrl.u32 %v123_v33, 16 }
  0x84   :  { %vm598_vm11 = vcmp.ne.s32.totalorder %v208_v39, 0  ;;  %vm614_vm12 = vcmp.lt.s32.totalorder %v208_v39, 0  ;;  %v646_v45 = vadd.s32 31, %v208_v39  ;;  %vm133_vm14 = vc.u32 %v131_v42, %v127_v38 }
  0x85   :  { %vm630_vm13 = vmand %vm614_vm12, %vm598_vm11  ;;  %v135_v51 = vadd.s32 %v131_v42, %v127_v38  ;;  %v173_v54 = vadd.s32 %v172_v36, %v170_v47  ;;  %v132_v48 = vadd.s32 %v130_v50, %v124_v40  ;;  %v134_v55 = vsel %vm133_vm14, 1, %v892_v32  ;;  %v709_v36 = vld [vmem:[#allocation5] sm:$0xff]  ;;  %v809_v38 = vld [vmem:[%s1103_s2] ss:$0 sm:$0xff] }
  0x86   :  { %v662_v53 = vsel %vm630_vm13, %v646_v45, %v208_v39  ;;  %v92_v58 = vmul.u32 33825, %v87_v18  ;;  %v93_v59 = vshll.u32 %v90_v43, 16  ;;  %v95_v62 = vshll.u32 %v91_v44, 16 }
  0x87   :  { %v678_v31 = vadd.s32 1, %v662_v53  ;;  %v174_v60 = vshrl.u32 %v173_v54, 4  ;;  %v136_v61 = vadd.s32 %v134_v55, %v132_v48  ;;  %vm139_vm15 = vc.u32 %v135_v51, 2216757314 }
  0x88   :  { %vm97_vm1 = vc.u32 %v89_v52, %v93_v59  ;;  %v99_v63 = vadd.s32 %v93_v59, %v89_v52  ;;  %v94_v5 = vshrl.u32 %v90_v43, 16  ;;  %v140_v7 = vsel %vm139_vm15, 1, %v892_v32 }
  0x89   :  { %vm696_vm0 = vcmp.ge.s32.totalorder %v678_v31, %v970_v37  ;;  %v175_v0 = vmul.u32 31, %v174_v60  ;;  %v137_v4 = vadd.s32 %v136_v61, %v126_v41  ;;  %v98_v27 = vsel %vm97_vm1, 1, %v892_v32 }
  0x8a   :  { %798 = vmatpush.xpose.msk.msra.mxu0 %vm696_vm0, %v712_v56  ;;  %v100_v8 = vadd.s32 %v98_v27, %v92_v58  ;;  %vm101_vm2 = vc.u32 %v99_v63, %v95_v62  ;;  %v103_v25 = vadd.s32 %v99_v63, %v95_v62  ;;  %v96_v14 = vshrl.u32 %v91_v44, 16 }
  0x8b   :  { %v176_v11 = vsub.s32 %v1046_v49, %v175_v0  ;;  %v138_v9 = vadd.s32 %v137_v4, %v128_v57  ;;  %v102_v13 = vsel %vm101_vm2, 1, %v892_v32 }
  0x8c   :  { %v104_v15 = vadd.s32 %v102_v13, %v100_v8  ;;  %vm107_vm3 = vc.u32 %v103_v25, 2216757314 }
  0x8d   :  { %vm597_vm4 = vcmp.ne.s32.totalorder %v176_v11, 0  ;;  %vm613_vm5 = vcmp.lt.s32.totalorder %v176_v11, 0  ;;  %v645_v16 = vadd.s32 31, %v176_v11  ;;  %v141_v17 = vadd.s32 %v140_v7, %v138_v9 }
  0x8e   :  { %vm629_vm6 = vmand %vm613_vm5, %vm597_vm4  ;;  %v105_v18 = vadd.s32 %v104_v15, %v94_v5  ;;  %v108_v21 = vsel %vm107_vm3, 1, %v892_v32 }
  0x8f   :  { %v661_v19 = vsel %vm629_vm6, %v645_v16, %v176_v11  ;;  %v142_v20 = vshrl.u32 %v141_v17, 4 }
  0x90   :  { %v677_v46 = vadd.s32 1, %v661_v19  ;;  %v106_v23 = vadd.s32 %v105_v18, %v96_v14 }
  0x91   :  { %v143_v49 = vmul.u32 31, %v142_v20 }
  0x92   :  { %vm695_vm7 = vcmp.ge.s32.totalorder %v677_v46, %v970_v37  ;;  %v109_v28 = vadd.s32 %v108_v21, %v106_v23 }
  0x93   :  { %799 = vmatpush.xpose.msk.msra.mxu0 %vm695_vm7, %v711_v22  ;;  %v144_v24 = vsub.s32 %v1070_v6, %v143_v49 }
  0x94   :  { %v110_v26 = vshrl.u32 %v109_v28, 4 }
  0x95   :  { %vm596_vm8 = vcmp.ne.s32.totalorder %v144_v24, 0  ;;  %vm612_vm9 = vcmp.lt.s32.totalorder %v144_v24, 0  ;;  %v644_v29 = vadd.s32 31, %v144_v24 }
  0x96   :  { %vm628_vm10 = vmand %vm612_vm9, %vm596_vm8  ;;  %v111_v30 = vmul.u32 31, %v110_v26 }
  0x97   :  { %v660_v10 = vsel %vm628_vm10, %v644_v29, %v144_v24 }
  0x98   :  { %v676_v33 = vadd.s32 1, %v660_v10  ;;  %v112_v32 = vsub.s32 %v925_v1, %v111_v30 }
  0x9a   :  { %vm694_vm11 = vcmp.ge.s32.totalorder %v676_v33, %v970_v37  ;;  %vm595_vm12 = vcmp.ne.s32.totalorder %v112_v32, 0  ;;  %vm611_vm13 = vcmp.lt.s32.totalorder %v112_v32, 0  ;;  %v643_v34 = vadd.s32 31, %v112_v32 }
  0x9b   :  { %800 = vmatpush.xpose.msk.msra.mxu0 %vm694_vm11, %v710_v12  ;;  %vm627_vm14 = vmand %vm611_vm13, %vm595_vm12 }
  0x9c   :  { %v659_v35 = vsel %vm627_vm14, %v643_v34, %v112_v32 }
  0x9d   :  { %v675_v6 = vadd.s32 1, %v659_v35 }
  0x9f   :  { %vm693_vm15 = vcmp.ge.s32.totalorder %v675_v6, %v970_v37 }
  0xa0   :  { %801 = vmatpush.xpose.msk.msra.mxu0 %vm693_vm15, %v709_v36 }
  0xa3   :  { %762 = vmatmul.f32.vlgmr.msra.gmra.mxu0 %v741_v2 }
 0x120   :  { %v763_v1 = vpop.f32.mrf.mxu0 }
 0x121   :  { %v764_v39 = vadd.f32 %v809_v38, %v763_v1 }
 0x123   :  { %v766_v3 = vmax.f32 %v764_v39, 0.0 }
 0x125   :  { %767 = vst [vmem:[#allocation7] sm:$0xff] %v766_v3 }
 0x126   :  { %778 = dma.vmem_to_hbm [thread:$0]  %s774_s29, 128, %s776_s6, [#allocation4]  }
 0x127   :  { %886 = dma.done.wait [#allocation4], 128  }
 0x128   :  { %887 = vsyncadd [#allocation4], 4294967168 }
 0x129   :  { %783 = vsyncpa [#allocation3], 1 }
 0x12a   :  { %784 = vsyncpa [#allocation6], 1 }
 0x12b   :  { %785 = vsyncpa [#allocation4], 1 }

</bundles_post_ra>
